<compile_context>
chip_gen: v6e
topology: v6e:2x2x1
jax: 0.10.0
libtpu: 0.0.40
codegen_flags: <defaults>
</compile_context>

<pallas_src>
import functools

import jax
import jax.numpy as jnp
from jax.experimental import pallas as pl
from jax.experimental.pallas import tpu as pltpu


# ----------------------------------------------------------------------------
# Pallas kernel: fused GEMM + bias + activation (hot path of every layer).
# ----------------------------------------------------------------------------
def _gemm_bias_act_kernel(a_ref, b_ref, bias_ref, o_ref, *, act):
    acc = jnp.dot(a_ref[...], b_ref[...], preferred_element_type=jnp.float32)
    acc = acc + bias_ref[...]          # bias (1, Nout) broadcast over rows, f32
    if act == "relu":
        acc = jnp.maximum(acc, 0.0)
    elif act == "tanh":
        acc = jnp.tanh(acc)
    o_ref[...] = acc.astype(o_ref.dtype)


def gemm_bias_act(a, b, bias, act, out_dtype):
    """a: (M, K), b: (K, Nout) bf16, bias: (1, Nout) f32 -> (M, Nout) out_dtype."""
    M, K = a.shape
    Kb, Nout = b.shape
    assert K == Kb and bias.shape == (1, Nout)
    a = a.astype(jnp.bfloat16)
    b = b.astype(jnp.bfloat16)
    bias = bias.astype(jnp.float32)

    # Tile M when it is large (pipelined, megacore-shardable); otherwise one
    # full-extent block (exempt from the (8,128) divisibility rule).
    tile_m = M
    if M % 8 == 0:
        for cand in (512, 256, 128):
            if M % cand == 0:
                tile_m = cand
                break
    grid = (M // tile_m,)

    return pl.pallas_call(
        functools.partial(_gemm_bias_act_kernel, act=act),
        out_shape=jax.ShapeDtypeStruct((M, Nout), out_dtype),
        grid=grid,
        in_specs=[
            pl.BlockSpec((tile_m, K), lambda i: (i, 0)),
            pl.BlockSpec((K, Nout), lambda i: (0, 0)),
            pl.BlockSpec((1, Nout), lambda i: (0, 0)),
        ],
        out_specs=pl.BlockSpec((tile_m, Nout), lambda i: (i, 0)),
        compiler_params=pltpu.CompilerParams(
            dimension_semantics=("parallel",)),
    )(a, b, bias)


# ----------------------------------------------------------------------------
# ConvTranspose2d(4, stride=2, padding=1) via polyphase decomposition.
#   out[n, 2m+py, 2w+px, co] =
#       b[co] + sum_{dy,dx,ci} x_pad[n, m+py+dy, w+px+dx, ci]
#                              * W[ci, co, (3-py)-2dy, (3-px)-2dx]
# One GEMM: patches (N*(H+1)*(W+1), 4*Cin) @ Wg (4*Cin, 4*Cout); the 4 output
# columns blocks are the 4 parities, interleaved back afterwards.
# ----------------------------------------------------------------------------
def deconv4s2p1_polyphase(x, wg, bg, act, out_dtype):
    """x: (N, Hs, Ws, Cin) NHWC -> (N, 2Hs, 2Ws, Cout) NHWC."""
    N, Hs, Ws, Cin = x.shape
    Cout = wg.shape[1] // 4

    xp = jnp.pad(x, ((0, 0), (1, 1), (1, 1), (0, 0)))
    taps = [xp[:, dy:dy + Hs + 1, dx:dx + Ws + 1, :]
            for dy in (0, 1) for dx in (0, 1)]
    patches = jnp.concatenate(taps, axis=-1)               # (N, Hs+1, Ws+1, 4*Cin)
    a = patches.reshape(N * (Hs + 1) * (Ws + 1), 4 * Cin)

    y = gemm_bias_act(a, wg, bg, act, out_dtype)           # (M, 4*Cout)
    y6 = y.reshape(N, Hs + 1, Ws + 1, 2, 2, Cout)

    rows = []
    for py in (0, 1):
        cols = [y6[:, py:py + Hs, px:px + Ws, py, px, :] for px in (0, 1)]
        rows.append(jnp.stack(cols, axis=3))               # (N, Hs, Ws, 2, Cout)
    t = jnp.stack(rows, axis=2)                            # (N, Hs, 2, Ws, 2, Cout)
    return t.reshape(N, 2 * Hs, 2 * Ws, Cout)


# ----------------------------------------------------------------------------
# One-time weight preprocessing (hoisted out of the forward pass).
# ----------------------------------------------------------------------------
def prepare_params(params, image_shape, dim_factor):
    C, H, W = image_shape
    H_init, W_init = H // 8, W // 8
    S = W_init * H_init
    C1 = 4 * dim_factor

    # Linear: permute output columns so the GEMM directly yields the
    # NHWC-flattened layout of PyTorch's view(N, -1, W_init, H_init).
    # new column j = s*C1 + c  <-  old column c*S + s
    perm = (jnp.arange(C1)[None, :] * S + jnp.arange(S)[:, None]).reshape(-1)
    prepared = {
        "lin_w": params["lin_w"].T[:, perm].astype(jnp.bfloat16),   # (noise, S*C1)
        "lin_b": params["lin_b"][perm].astype(jnp.float32).reshape(1, -1),
    }

    # Deconvs: Wg[(dy*2+dx)*Cin + ci, (py*2+px)*Cout + co]
    #            = W[ci, co, (3-py)-2dy, (3-px)-2dx]
    for name in ("dc1", "dc2", "dc3"):
        w = params[name + "_w"]                     # (Cin, Cout, 4, 4)
        b = params[name + "_b"]
        blocks = []
        for dy in (0, 1):
            for dx in (0, 1):
                cols = []
                for py in (0, 1):
                    for px in (0, 1):
                        ky = 3 - py - 2 * dy
                        kx = 3 - px - 2 * dx
                        cols.append(w[:, :, ky, kx])            # (Cin, Cout)
                blocks.append(jnp.concatenate(cols, axis=1))    # (Cin, 4*Cout)
        prepared[name + "_w"] = jnp.concatenate(blocks, axis=0).astype(jnp.bfloat16)
        prepared[name + "_b"] = jnp.tile(b, 4).astype(jnp.float32).reshape(1, -1)
    return prepared


# ----------------------------------------------------------------------------
# Generator forward pass (NHWC internally, NCHW result).
# ----------------------------------------------------------------------------
def generator_forward(prepared, z, image_shape, dim_factor):
    C, H, W = image_shape
    H_init, W_init = H // 8, W // 8
    N = z.shape[0]
    C1 = 4 * dim_factor

    y = gemm_bias_act(z, prepared["lin_w"], prepared["lin_b"], "relu", jnp.bfloat16)
    x = y.reshape(N, W_init, H_init, C1)     # NHWC; conv "H" axis = W_init (PyTorch quirk)

    x = deconv4s2p1_polyphase(x, prepared["dc1_w"], prepared["dc1_b"], "relu", jnp.bfloat16)
    x = deconv4s2p1_polyphase(x, prepared["dc2_w"], prepared["dc2_b"], "relu", jnp.bfloat16)
    x = deconv4s2p1_polyphase(x, prepared["dc3_w"], prepared["dc3_b"], "tanh", jnp.float32)
    return jnp.transpose(x, (0, 3, 1, 2))    # single NHWC -> NCHW conversion


# ----------------------------------------------------------------------------
# Pure-JAX reference (PyTorch semantics) for correctness checking.
# ----------------------------------------------------------------------------
def reference_forward(params, z, image_shape, dim_factor):
    C, H, W = image_shape
    H_init, W_init = H // 8, W // 8
    N = z.shape[0]

    def deconv(x, w, b):
        rhs = jnp.transpose(w[:, :, ::-1, ::-1], (1, 0, 2, 3))   # (Cout, Cin, 4, 4)
        y = jax.lax.conv_general_dilated(
            x, rhs, window_strides=(1, 1), padding=((2, 2), (2, 2)),
            lhs_dilation=(2, 2), dimension_numbers=("NCHW", "OIHW", "NCHW"))
        return y + b[None, :, None, None]

    H1 = jnp.maximum(z @ params["lin_w"].T + params["lin_b"], 0.0)
    x = H1.reshape(N, 4 * dim_factor, W_init, H_init)
    x = jnp.maximum(deconv(x, params["dc1_w"], params["dc1_b"]), 0.0)
    x = jnp.maximum(deconv(x, params["dc2_w"], params["dc2_b"]), 0.0)
    return jnp.tanh(deconv(x, params["dc3_w"], params["dc3_b"]))


def init_params(key, image_shape, noise_dim, dim_factor):
    C, H, W = image_shape
    H_init, W_init = H // 8, W // 8
    lin_out = 4 * dim_factor * H_init * W_init
    ks = jax.random.split(key, 8)
    s = 0.1
    return {
        "lin_w": s * jax.random.normal(ks[0], (lin_out, noise_dim), jnp.float32),
        "lin_b": s * jax.random.normal(ks[1], (lin_out,), jnp.float32),
        # ConvTranspose2d weights: (Cin, Cout, kH, kW)
        "dc1_w": s * jax.random.normal(ks[2], (4 * dim_factor, 2 * dim_factor, 4, 4), jnp.float32),
        "dc1_b": s * jax.random.normal(ks[3], (2 * dim_factor,), jnp.float32),
        "dc2_w": s * jax.random.normal(ks[4], (2 * dim_factor, dim_factor, 4, 4), jnp.float32),
        "dc2_b": s * jax.random.normal(ks[5], (dim_factor,), jnp.float32),
        "dc3_w": s * jax.random.normal(ks[6], (dim_factor, C, 4, 4), jnp.float32),
        "dc3_b": s * jax.random.normal(ks[7], (C,), jnp.float32),
    }


if __name__ == "__main__":
    image_shape = (3, 16, 16)
    noise_dim = 32
    dim_factor = 8
    batch = 2

    key = jax.random.PRNGKey(0)
    kp, kz = jax.random.split(key)
    params = init_params(kp, image_shape, noise_dim, dim_factor)
    z = jax.random.normal(kz, (batch, noise_dim), jnp.float32)

    prepared = prepare_params(params, image_shape, dim_factor)   # one-time prep
    fwd = jax.jit(functools.partial(generator_forward,
                                    image_shape=image_shape,
                                    dim_factor=dim_factor))
    out = fwd(prepared, z)
    jax.block_until_ready(out)

    C, H, W = image_shape
    assert out.shape == (batch, C, H, W), out.shape
    assert bool(jnp.all(jnp.isfinite(out)))

    # Correctness check vs. pure-JAX PyTorch-semantics reference (bf16 tolerance).
    ref = reference_forward(params, z, image_shape, dim_factor)
    max_diff = float(jnp.max(jnp.abs(out - ref)))
    assert max_diff < 5e-2, max_diff

    # TODO(synk): for large batch/resolution, additionally pad GEMM Nout to a
    # multiple of 128 lanes and set vmem_limit_bytes for v7x's 64 MiB VMEM.
    print("KERNEL_OK")
</pallas_src>

<mosaic_0001>
module attributes {stable_mosaic.version = 11 : i64} {
  func.func @_gemm_bias_act_kernel(%arg0: i32, %arg1: memref<2x32xbf16, #tpu.memory_space<vmem>>, %arg2: memref<32x128xbf16, #tpu.memory_space<vmem>>, %arg3: memref<1x128xf32, #tpu.memory_space<vmem>>, %arg4: memref<2x128xbf16, #tpu.memory_space<vmem>>) attributes {dimension_semantics = [#tpu.dimension_semantics<parallel>], iteration_bounds = array<i64: 1>, scalar_prefetch = 0 : i64, scratch_operands = 0 : i64, tpu.core_type = #tpu.core_type<tc>, window_params = [{transform_indices = @transform_0, window_bounds = array<i64: 2, 32>}, {pipeline_mode = #tpu.pipeline_mode<synchronous>, transform_indices = @transform_1, window_bounds = array<i64: 32, 128>}, {pipeline_mode = #tpu.pipeline_mode<synchronous>, transform_indices = @transform_2, window_bounds = array<i64: 1, 128>}, {transform_indices = @transform_3, window_bounds = array<i64: 2, 128>}]} {
    %c0 = arith.constant 0 : index
    %c0_0 = arith.constant 0 : index
    %0 = vector.load %arg1[%c0, %c0_0] : memref<2x32xbf16, #tpu.memory_space<vmem>>, vector<2x32xbf16>
    %c0_1 = arith.constant 0 : index
    %c0_2 = arith.constant 0 : index
    %1 = vector.load %arg2[%c0_1, %c0_2] : memref<32x128xbf16, #tpu.memory_space<vmem>>, vector<32x128xbf16>
    %cst = arith.constant dense<0.000000e+00> : vector<2x128xf32>
    %2 = tpu.matmul %0, %1, %cst {dimension_numbers = #tpu.dot_dimension_numbers<[1], [0], [0], [1], [0, 0, 1, 1], [], []>} : vector<2x32xbf16>, vector<32x128xbf16>, vector<2x128xf32> -> vector<2x128xf32>
    %c0_3 = arith.constant 0 : index
    %c0_4 = arith.constant 0 : index
    %3 = vector.load %arg3[%c0_3, %c0_4] : memref<1x128xf32, #tpu.memory_space<vmem>>, vector<1x128xf32>
    %4 = vector.broadcast %3 : vector<1x128xf32> to vector<2x128xf32>
    %5 = arith.addf %2, %4 : vector<2x128xf32>
    %cst_5 = arith.constant 0.000000e+00 : f32
    %6 = vector.broadcast %cst_5 : f32 to vector<2x128xf32>
    %7 = arith.maximumf %5, %6 : vector<2x128xf32>
    %8 = arith.truncf %7 : vector<2x128xf32> to vector<2x128xbf16>
    %c0_6 = arith.constant 0 : index
    %c0_7 = arith.constant 0 : index
    %9 = vector.load %arg4[%c0_6, %c0_7] : memref<2x128xbf16, #tpu.memory_space<vmem>>, vector<2x128xbf16>
    tpu.vector_store %arg4[%c0_6, %c0_7], %8 {strides = array<i32>} : memref<2x128xbf16, #tpu.memory_space<vmem>>, vector<2x128xbf16>,
    return
  }
  func.func @transform_0(%arg0: i32) -> (i32, i32) {
    %c0_i32 = arith.constant 0 : i32
    %c0_i32_0 = arith.constant 0 : i32
    return %arg0, %c0_i32 : i32, i32
  }
  func.func @transform_1(%arg0: i32) -> (i32, i32) {
    %c0_i32 = arith.constant 0 : i32
    %c0_i32_0 = arith.constant 0 : i32
    %c0_i32_1 = arith.constant 0 : i32
    return %c0_i32, %c0_i32_0 : i32, i32
  }
  func.func @transform_2(%arg0: i32) -> (i32, i32) {
    %c0_i32 = arith.constant 0 : i32
    %c0_i32_0 = arith.constant 0 : i32
    %c0_i32_1 = arith.constant 0 : i32
    return %c0_i32, %c0_i32_0 : i32, i32
  }
  func.func @transform_3(%arg0: i32) -> (i32, i32) {
    %c0_i32 = arith.constant 0 : i32
    %c0_i32_0 = arith.constant 0 : i32
    return %arg0, %c0_i32 : i32, i32
  }
}

module attributes {stable_mosaic.version = 11 : i64} {
  func.func @_gemm_bias_act_kernel(%arg0: i32, %arg1: memref<18x128xbf16, #tpu.memory_space<vmem>>, %arg2: memref<128x64xbf16, #tpu.memory_space<vmem>>, %arg3: memref<1x64xf32, #tpu.memory_space<vmem>>, %arg4: memref<18x64xbf16, #tpu.memory_space<vmem>>) attributes {dimension_semantics = [#tpu.dimension_semantics<parallel>], iteration_bounds = array<i64: 1>, scalar_prefetch = 0 : i64, scratch_operands = 0 : i64, tpu.core_type = #tpu.core_type<tc>, window_params = [{transform_indices = @transform_0, window_bounds = array<i64: 18, 128>}, {pipeline_mode = #tpu.pipeline_mode<synchronous>, transform_indices = @transform_1, window_bounds = array<i64: 128, 64>}, {pipeline_mode = #tpu.pipeline_mode<synchronous>, transform_indices = @transform_2, window_bounds = array<i64: 1, 64>}, {transform_indices = @transform_3, window_bounds = array<i64: 18, 64>}]} {
    %c0 = arith.constant 0 : index
    %c0_0 = arith.constant 0 : index
    %0 = vector.load %arg1[%c0, %c0_0] : memref<18x128xbf16, #tpu.memory_space<vmem>>, vector<18x128xbf16>
    %c0_1 = arith.constant 0 : index
    %c0_2 = arith.constant 0 : index
    %1 = vector.load %arg2[%c0_1, %c0_2] : memref<128x64xbf16, #tpu.memory_space<vmem>>, vector<128x64xbf16>
    %cst = arith.constant dense<0.000000e+00> : vector<18x64xf32>
    %2 = tpu.matmul %0, %1, %cst {dimension_numbers = #tpu.dot_dimension_numbers<[1], [0], [0], [1], [0, 0, 1, 1], [], []>} : vector<18x128xbf16>, vector<128x64xbf16>, vector<18x64xf32> -> vector<18x64xf32>
    %c0_3 = arith.constant 0 : index
    %c0_4 = arith.constant 0 : index
    %3 = vector.load %arg3[%c0_3, %c0_4] : memref<1x64xf32, #tpu.memory_space<vmem>>, vector<1x64xf32>
    %4 = vector.broadcast %3 : vector<1x64xf32> to vector<18x64xf32>
    %5 = arith.addf %2, %4 : vector<18x64xf32>
    %cst_5 = arith.constant 0.000000e+00 : f32
    %6 = vector.broadcast %cst_5 : f32 to vector<18x64xf32>
    %7 = arith.maximumf %5, %6 : vector<18x64xf32>
    %8 = arith.truncf %7 : vector<18x64xf32> to vector<18x64xbf16>
    %c0_6 = arith.constant 0 : index
    %c0_7 = arith.constant 0 : index
    %9 = vector.load %arg4[%c0_6, %c0_7] : memref<18x64xbf16, #tpu.memory_space<vmem>>, vector<18x64xbf16>
    tpu.vector_store %arg4[%c0_6, %c0_7], %8 {strides = array<i32>} : memref<18x64xbf16, #tpu.memory_space<vmem>>, vector<18x64xbf16>,
    return
  }
  func.func @transform_0(%arg0: i32) -> (i32, i32) {
    %c0_i32 = arith.constant 0 : i32
    %c0_i32_0 = arith.constant 0 : i32
    return %arg0, %c0_i32 : i32, i32
  }
  func.func @transform_1(%arg0: i32) -> (i32, i32) {
    %c0_i32 = arith.constant 0 : i32
    %c0_i32_0 = arith.constant 0 : i32
    %c0_i32_1 = arith.constant 0 : i32
    return %c0_i32, %c0_i32_0 : i32, i32
  }
  func.func @transform_2(%arg0: i32) -> (i32, i32) {
    %c0_i32 = arith.constant 0 : i32
    %c0_i32_0 = arith.constant 0 : i32
    %c0_i32_1 = arith.constant 0 : i32
    return %c0_i32, %c0_i32_0 : i32, i32
  }
  func.func @transform_3(%arg0: i32) -> (i32, i32) {
    %c0_i32 = arith.constant 0 : i32
    %c0_i32_0 = arith.constant 0 : i32
    return %arg0, %c0_i32 : i32, i32
  }
}

module attributes {stable_mosaic.version = 11 : i64} {
  func.func @_gemm_bias_act_kernel(%arg0: i32, %arg1: memref<50x64xbf16, #tpu.memory_space<vmem>>, %arg2: memref<64x32xbf16, #tpu.memory_space<vmem>>, %arg3: memref<1x32xf32, #tpu.memory_space<vmem>>, %arg4: memref<50x32xbf16, #tpu.memory_space<vmem>>) attributes {dimension_semantics = [#tpu.dimension_semantics<parallel>], iteration_bounds = array<i64: 1>, scalar_prefetch = 0 : i64, scratch_operands = 0 : i64, tpu.core_type = #tpu.core_type<tc>, window_params = [{transform_indices = @transform_0, window_bounds = array<i64: 50, 64>}, {pipeline_mode = #tpu.pipeline_mode<synchronous>, transform_indices = @transform_1, window_bounds = array<i64: 64, 32>}, {pipeline_mode = #tpu.pipeline_mode<synchronous>, transform_indices = @transform_2, window_bounds = array<i64: 1, 32>}, {transform_indices = @transform_3, window_bounds = array<i64: 50, 32>}]} {
    %c0 = arith.constant 0 : index
    %c0_0 = arith.constant 0 : index
    %0 = vector.load %arg1[%c0, %c0_0] : memref<50x64xbf16, #tpu.memory_space<vmem>>, vector<50x64xbf16>
    %c0_1 = arith.constant 0 : index
    %c0_2 = arith.constant 0 : index
    %1 = vector.load %arg2[%c0_1, %c0_2] : memref<64x32xbf16, #tpu.memory_space<vmem>>, vector<64x32xbf16>
    %cst = arith.constant dense<0.000000e+00> : vector<50x32xf32>
    %2 = tpu.matmul %0, %1, %cst {dimension_numbers = #tpu.dot_dimension_numbers<[1], [0], [0], [1], [0, 0, 1, 1], [], []>} : vector<50x64xbf16>, vector<64x32xbf16>, vector<50x32xf32> -> vector<50x32xf32>
    %c0_3 = arith.constant 0 : index
    %c0_4 = arith.constant 0 : index
    %3 = vector.load %arg3[%c0_3, %c0_4] : memref<1x32xf32, #tpu.memory_space<vmem>>, vector<1x32xf32>
    %4 = vector.broadcast %3 : vector<1x32xf32> to vector<50x32xf32>
    %5 = arith.addf %2, %4 : vector<50x32xf32>
    %cst_5 = arith.constant 0.000000e+00 : f32
    %6 = vector.broadcast %cst_5 : f32 to vector<50x32xf32>
    %7 = arith.maximumf %5, %6 : vector<50x32xf32>
    %8 = arith.truncf %7 : vector<50x32xf32> to vector<50x32xbf16>
    %c0_6 = arith.constant 0 : index
    %c0_7 = arith.constant 0 : index
    %9 = vector.load %arg4[%c0_6, %c0_7] : memref<50x32xbf16, #tpu.memory_space<vmem>>, vector<50x32xbf16>
    tpu.vector_store %arg4[%c0_6, %c0_7], %8 {strides = array<i32>} : memref<50x32xbf16, #tpu.memory_space<vmem>>, vector<50x32xbf16>,
    return
  }
  func.func @transform_0(%arg0: i32) -> (i32, i32) {
    %c0_i32 = arith.constant 0 : i32
    %c0_i32_0 = arith.constant 0 : i32
    return %arg0, %c0_i32 : i32, i32
  }
  func.func @transform_1(%arg0: i32) -> (i32, i32) {
    %c0_i32 = arith.constant 0 : i32
    %c0_i32_0 = arith.constant 0 : i32
    %c0_i32_1 = arith.constant 0 : i32
    return %c0_i32, %c0_i32_0 : i32, i32
  }
  func.func @transform_2(%arg0: i32) -> (i32, i32) {
    %c0_i32 = arith.constant 0 : i32
    %c0_i32_0 = arith.constant 0 : i32
    %c0_i32_1 = arith.constant 0 : i32
    return %c0_i32, %c0_i32_0 : i32, i32
  }
  func.func @transform_3(%arg0: i32) -> (i32, i32) {
    %c0_i32 = arith.constant 0 : i32
    %c0_i32_0 = arith.constant 0 : i32
    return %arg0, %c0_i32 : i32, i32
  }
}

module attributes {stable_mosaic.version = 11 : i64} {
  func.func @_gemm_bias_act_kernel(%arg0: i32, %arg1: memref<162x32xbf16, #tpu.memory_space<vmem>>, %arg2: memref<32x12xbf16, #tpu.memory_space<vmem>>, %arg3: memref<1x12xf32, #tpu.memory_space<vmem>>, %arg4: memref<162x12xf32, #tpu.memory_space<vmem>>) attributes {dimension_semantics = [#tpu.dimension_semantics<parallel>], iteration_bounds = array<i64: 1>, scalar_prefetch = 0 : i64, scratch_operands = 0 : i64, tpu.core_type = #tpu.core_type<tc>, window_params = [{transform_indices = @transform_0, window_bounds = array<i64: 162, 32>}, {pipeline_mode = #tpu.pipeline_mode<synchronous>, transform_indices = @transform_1, window_bounds = array<i64: 32, 12>}, {pipeline_mode = #tpu.pipeline_mode<synchronous>, transform_indices = @transform_2, window_bounds = array<i64: 1, 12>}, {transform_indices = @transform_3, window_bounds = array<i64: 162, 12>}]} {
    %c0 = arith.constant 0 : index
    %c0_0 = arith.constant 0 : index
    %0 = vector.load %arg1[%c0, %c0_0] : memref<162x32xbf16, #tpu.memory_space<vmem>>, vector<162x32xbf16>
    %c0_1 = arith.constant 0 : index
    %c0_2 = arith.constant 0 : index
    %1 = vector.load %arg2[%c0_1, %c0_2] : memref<32x12xbf16, #tpu.memory_space<vmem>>, vector<32x12xbf16>
    %cst = arith.constant dense<0.000000e+00> : vector<162x12xf32>
    %2 = tpu.matmul %0, %1, %cst {dimension_numbers = #tpu.dot_dimension_numbers<[1], [0], [0], [1], [0, 0, 1, 1], [], []>} : vector<162x32xbf16>, vector<32x12xbf16>, vector<162x12xf32> -> vector<162x12xf32>
    %c0_3 = arith.constant 0 : index
    %c0_4 = arith.constant 0 : index
    %3 = vector.load %arg3[%c0_3, %c0_4] : memref<1x12xf32, #tpu.memory_space<vmem>>, vector<1x12xf32>
    %4 = vector.broadcast %3 : vector<1x12xf32> to vector<162x12xf32>
    %5 = arith.addf %2, %4 : vector<162x12xf32>
    %6 = math.tanh %5 : vector<162x12xf32>
    %c0_5 = arith.constant 0 : index
    %c0_6 = arith.constant 0 : index
    %7 = vector.load %arg4[%c0_5, %c0_6] : memref<162x12xf32, #tpu.memory_space<vmem>>, vector<162x12xf32>
    tpu.vector_store %arg4[%c0_5, %c0_6], %6 {strides = array<i32>} : memref<162x12xf32, #tpu.memory_space<vmem>>, vector<162x12xf32>,
    return
  }
  func.func @transform_0(%arg0: i32) -> (i32, i32) {
    %c0_i32 = arith.constant 0 : i32
    %c0_i32_0 = arith.constant 0 : i32
    return %arg0, %c0_i32 : i32, i32
  }
  func.func @transform_1(%arg0: i32) -> (i32, i32) {
    %c0_i32 = arith.constant 0 : i32
    %c0_i32_0 = arith.constant 0 : i32
    %c0_i32_1 = arith.constant 0 : i32
    return %c0_i32, %c0_i32_0 : i32, i32
  }
  func.func @transform_2(%arg0: i32) -> (i32, i32) {
    %c0_i32 = arith.constant 0 : i32
    %c0_i32_0 = arith.constant 0 : i32
    %c0_i32_1 = arith.constant 0 : i32
    return %c0_i32, %c0_i32_0 : i32, i32
  }
  func.func @transform_3(%arg0: i32) -> (i32, i32) {
    %c0_i32 = arith.constant 0 : i32
    %c0_i32_0 = arith.constant 0 : i32
    return %arg0, %c0_i32 : i32, i32
  }
}

</mosaic_0001>

<bundles_post_ra>
// kernel: generator_forward.4
= control target key start
LH: loop header
LB: loop body
LE: loop exit
PB: predicated region body
PF: predicated region fallthrough
CT: control target
= control target key end

     0   :  { %8 = vsyncpa [#allocation3], 0  ;;  %s149_s12 = smov [#allocation2]   ;;  %s186_s0 = inlined_call_operand.vmem [shape: bf16[2,32], index: 0, kind: input, shape index: {}]   ;;  %s187_s1 = inlined_call_operand.hbm [shape: bf16[32,128], index: 1, kind: input, shape index: {}]   ;;  %s188_s2 = inlined_call_operand.vmem [shape: f32[1,128], index: 2, kind: input, shape index: {}]   ;;  %s189_s3 = inlined_call_operand.vmem [shape: bf16[2,128], index: 3, kind: output, shape index: {}]  }
   0x1   :  { %s16_s13 = sshll.u32 %s149_s12, 4  ;;  %s17_s13 = int_to_ptr.vmem [resolvable:$true] %s16_s13 }
   0x2   :  { %s135_s14 = scalar_lea.vmem %s17_s13, 256  ;;  %p140_p1 = scmp.lt.s32.totalorder %s17_s13, %s17_s13 }
   0x3   :  { %p136_p0 = scmp.ne.s32.totalorder %s17_s13, %s135_s14  ;;  %p141_p2 = scmp.lt.s32.totalorder %s135_s14, %s135_s14 }
   0x5   :  { %p142_p3 = por %p141_p2, %p140_p1 }
   0x7   :  { %p143_p4 = pnand %p142_p3, %p136_p0 }
   0x9   :  { %146 = shalt.err (!%p143_p4)
}
   0xa   :  { %s150_s15 = smov 64   ;;  %s151_s16 = smov 4  }
   0xb   :  { %22 = dma.hbm_to_vmem [thread:$0]  %s187_s1, 256, %s17_s13, [#allocation3], %s150_s15, %s150_s15, %s151_s16  }
   0xc   :  { %147 = dma.done.wait [#allocation3], 256  }
   0xd   :  { %148 = vsyncadd [#allocation3], 4294967040  ;;  %v152_v0 = vmov 0.0   ;;  %vm153_vm0 = vmmov 0   ;;  %v125_v1 = vld [vmem:[#allocation2 + $0x8] sm:$0xff]   ;;  %v126_v2 = vld [vmem:[#allocation2] sm:$0xff]  }
   0xe   :  { %112 = vmatprep.subr.bf16.mxu0 %v152_v0  ;;  %116 = vmatprep.mubr.msk.bf16.mxu0 %vm153_vm0, %v152_v0  ;;  %v29_v3 = vld [vmem:[%s186_s0] sm:$0x1]  ;;  %vm53_vm1 = vcmask 261120  }
   0xf   :  { %113 = vmatpush3.bf16.msra.mxu0 %v125_v1  ;;  %v105_v4 = vld [vmem:[%s188_s2] ss:$0 sm:$0xff] }
  0x10   :  { %114 = vmatprep.subr.bf16.mxu0 %v152_v0 }
  0x13   :  { %115 = vmatpush3.bf16.msra.mxu0 %v126_v2 }
  0x16   :  { %117 = vmatmul.mubr.msk.bf16.vlgmr.msra.gmra.mxu0 %vm53_vm1, %v29_v3 }
  0xd6   :  { %v91_v5 = vpop.f32.mrf.mxu0 }
  0xd7   :  { %v92_v6 = vadd.f32 %v105_v4, %v91_v5 }
  0xd8   :  { %v118_v7 = vpop.f32.mrf.mxu0 }
  0xd9   :  { %v97_v8 = vmax.f32 %v92_v6, 0.0 }
  0xda   :  { %v94_v9 = vpop.f32.mrf.mxu0 }
  0xdb   :  { %v98_v10 = vpack.c.bf16 %v97_v8, %v97_v8 }
  0xdc   :  { %v119_v11 = vpop.f32.mrf.mxu0 }
  0xdd   :  { %99 = vst [vmem:[%s189_s3] sm:$0x1] %v98_v10 }
  0xde   :  { %104 = vsyncpa [#allocation3], 1 }

// kernel: generator_forward.5
= control target key start
LH: loop header
LB: loop body
LE: loop exit
PB: predicated region body
PF: predicated region fallthrough
CT: control target
= control target key end

     0   :  { %vm166_vm0 = vcmask 516096   ;;  %vm163_vm1 = vcmask 519168   ;;  %s291_s1 = inlined_call_operand.vmem [shape: bf16[128,64], index: 1, kind: input, shape index: {}]   ;;  %s292_s0 = inlined_call_operand.vmem [shape: bf16[18,128], index: 0, kind: input, shape index: {}]   ;;  %s293_s2 = inlined_call_operand.vmem [shape: f32[1,64], index: 2, kind: input, shape index: {}]   ;;  %s294_s3 = inlined_call_operand.vmem [shape: bf16[18,64], index: 3, kind: output, shape index: {}]  }
   0x1   :  { %v219_v0 = vld [vmem:[%s291_s1 + $0x38] sm:$0xff]   ;;  %v220_v1 = vld [vmem:[%s291_s1 + $0x30] sm:$0xff]   ;;  %v221_v2 = vld [vmem:[%s291_s1 + $0x28] sm:$0xff]  }
   0x2   :  { %199 = vmatprep.subr.bf16.mxu0 %v219_v0  ;;  %v222_v3 = vld [vmem:[%s291_s1 + $0x20] sm:$0xff]   ;;  %v223_v5 = vld [vmem:[%s291_s1 + $0x18] sm:$0xff]   ;;  %v224_v6 = vld [vmem:[%s291_s1 + $0x10] sm:$0xff]  }
   0x3   :  { %200 = vmatpush3.bf16.msra.mxu0 %v219_v0  ;;  %v227_v4 = vld [vmem:[%s292_s0] sm:$0xff]   ;;  %v225_v7 = vld [vmem:[%s291_s1 + $0x8] sm:$0xff]  }
   0x4   :  { %201 = vmatprep.subr.bf16.mxu0 %v220_v1  ;;  %215 = vmatprep.mubr.bf16.mxu0 %v227_v4  ;;  %v226_v8 = vld [vmem:[%s291_s1] sm:$0xff]   ;;  %v228_v9 = vld [vmem:[%s292_s0 + $0x8] ss:$0 sps:$4 sm:$0x11]  }
   0x5   :  { %v172_v10 = vld [vmem:[%s293_s2] ss:$0 sm:$0xff] }
   0x7   :  { %202 = vmatpush3.bf16.msra.mxu0 %v220_v1 }
   0x8   :  { %203 = vmatprep.subr.bf16.mxu0 %v221_v2 }
   0xb   :  { %204 = vmatpush3.bf16.msra.mxu0 %v221_v2 }
   0xc   :  { %205 = vmatprep.subr.bf16.mxu0 %v222_v3 }
   0xf   :  { %206 = vmatpush3.bf16.msra.mxu0 %v222_v3 }
  0x10   :  { %207 = vmatprep.subr.bf16.mxu0 %v223_v5 }
  0x13   :  { %208 = vmatpush3.bf16.msra.mxu0 %v223_v5 }
  0x14   :  { %209 = vmatprep.subr.bf16.mxu0 %v224_v6 }
  0x17   :  { %210 = vmatpush3.bf16.msra.mxu0 %v224_v6 }
  0x18   :  { %211 = vmatprep.subr.bf16.mxu0 %v225_v7 }
  0x1b   :  { %212 = vmatpush3.bf16.msra.mxu0 %v225_v7 }
  0x1c   :  { %213 = vmatprep.subr.bf16.mxu0 %v226_v8 }
  0x1f   :  { %214 = vmatpush3.bf16.msra.mxu0 %v226_v8 }
  0x22   :  { %216 = vmatmul.mubr.bf16.vlgmr.msra.gmra.mxu0 %v228_v9 }
  0xe2   :  { %v217_v11 = vpop.f32.mrf.mxu0 }
  0xe3   :  { %v142_v12 = vadd.f32 %v217_v11, %v172_v10 }
  0xe4   :  { %v133_v13 = vpop.f32.mrf.mxu0 }
  0xe5   :  { %v149_v14 = vmax.f32 %v142_v12, 0.0  ;;  %v134_v15 = vadd.f32 %v172_v10, %v133_v13 }
  0xe6   :  { %v218_v16 = vpop.f32.mrf.mxu0 }
  0xe7   :  { %v188_v17 = vpack.c.bf16 %v149_v14, %v149_v14  ;;  %v147_v18 = vmax.f32 %v134_v15, 0.0 }
  0xe8   :  { %v136_v19 = vpop.f32.mrf.mxu0 }
  0xe9   :  { %167 = vst.msk [vmem:[%s294_s3 + $0x8] sm:$0x1] %vm166_vm0, %v188_v17  ;;  %v186_v20 = vpack.c.bf16 %v147_v18, %v147_v18  ;;  %v137_v21 = vadd.f32 %v172_v10, %v136_v19 }
  0xeb   :  { %164 = vst.msk [vmem:[%s294_s3] sm:$0xf] %vm163_vm1, %v186_v20  ;;  %v148_v22 = vmax.f32 %v137_v21, 0.0 }
  0xed   :  { %v187_v23 = vpack.c.bf16 %v148_v22, %v148_v22 }
  0xef   :  { %165 = vst.msk [vmem:[%s294_s3 + $0x4] sm:$0xf] %vm163_vm1, %v187_v23 }

// kernel: generator_forward.6
= control target key start
LH: loop header
LB: loop body
LE: loop exit
PB: predicated region body
PF: predicated region fallthrough
CT: control target
= control target key end

     0   :  { %vm79_vm0 = vcmask 523264   ;;  %vm192_vm1 = vcmask 257024   ;;  %vm199_vm2 = vcmask 253952   ;;  %s350_s1 = inlined_call_operand.vmem [shape: bf16[64,32], index: 1, kind: input, shape index: {}]   ;;  %s351_s0 = inlined_call_operand.vmem [shape: bf16[50,64], index: 0, kind: input, shape index: {}]   ;;  %s352_s2 = inlined_call_operand.vmem [shape: f32[1,32], index: 2, kind: input, shape index: {}]   ;;  %s353_s3 = inlined_call_operand.vmem [shape: bf16[50,32], index: 3, kind: output, shape index: {}]  }
   0x1   :  { %v264_v0 = vld [vmem:[%s350_s1 + $0x18] sm:$0xff]   ;;  %v265_v1 = vld [vmem:[%s350_s1 + $0x10] sm:$0xff]   ;;  %v266_v2 = vld [vmem:[%s350_s1 + $0x8] sm:$0xff]  }
   0x2   :  { %240 = vmatprep.subr.bf16.mxu0 %v264_v0  ;;  %256 = vmatprep.subr.bf16.mxu1 %v264_v0  ;;  %v268_v3 = vld [vmem:[%s351_s0] sm:$0xff]   ;;  %v269_v4 = vld [vmem:[%s351_s0 + $0x10] sm:$0xff]   ;;  %v270_v6 = vld [vmem:[%s351_s0 + $0x8] sm:$0xff]  }
   0x3   :  { %241 = vmatpush3.bf16.msra.mxu0 %v264_v0  ;;  %260 = vmatpush3.bf16.msra.mxu1 %v264_v0  ;;  %v267_v5 = vld [vmem:[%s350_s1] sm:$0xff]   ;;  %v271_v7 = vld [vmem:[%s351_s0 + $0x18] ss:$0 sps:$4 sm:$0x11]  }
   0x4   :  { %242 = vmatprep.subr.bf16.mxu0 %v265_v1  ;;  %257 = vmatprep.subr.bf16.mxu1 %v265_v1  ;;  %v205_v8 = vld [vmem:[%s352_s2] ss:$0 sm:$0xff] }
   0x5   :  { %248 = vmatprep.mubr.msk.bf16.mxu0 %vm79_vm0, %v268_v3  ;;  %252 = vmatprep.mubr.msk.bf16.mxu1 %vm79_vm0, %v269_v4 }
   0x7   :  { %243 = vmatpush3.bf16.msra.mxu0 %v265_v1  ;;  %261 = vmatpush3.bf16.msra.mxu1 %v265_v1 }
   0x8   :  { %244 = vmatprep.subr.bf16.mxu0 %v266_v2  ;;  %258 = vmatprep.subr.bf16.mxu1 %v266_v2 }
   0xb   :  { %245 = vmatpush3.bf16.msra.mxu0 %v266_v2  ;;  %262 = vmatpush3.bf16.msra.mxu1 %v266_v2 }
   0xc   :  { %246 = vmatprep.subr.bf16.mxu0 %v267_v5  ;;  %259 = vmatprep.subr.bf16.mxu1 %v267_v5 }
   0xf   :  { %247 = vmatpush3.bf16.msra.mxu0 %v267_v5  ;;  %263 = vmatpush3.bf16.msra.mxu1 %v267_v5 }
  0x12   :  { %249 = vmatmul.mubr.msk.bf16.vlgmr.msra.gmra.mxu0 %vm79_vm0, %v270_v6  ;;  %253 = vmatmul.mubr.msk.bf16.vlgmr.msra.gmra.mxu1 %vm79_vm0, %v271_v7 }
  0xd2   :  { %v250_v9 = vpop.f32.mrf.mxu0  ;;  %v254_v10 = vpop.f32.mrf.mxu1 }
  0xd3   :  { %v135_v11 = vadd.f32 %v250_v9, %v205_v8  ;;  %v151_v12 = vadd.f32 %v254_v10, %v205_v8 }
  0xd4   :  { %v126_v13 = vpop.f32.mrf.mxu0  ;;  %v142_v14 = vpop.f32.mrf.mxu1 }
  0xd5   :  { %v158_v15 = vmax.f32 %v135_v11, 0.0  ;;  %v162_v16 = vmax.f32 %v151_v12, 0.0  ;;  %v127_v17 = vadd.f32 %v205_v8, %v126_v13  ;;  %v143_v18 = vadd.f32 %v205_v8, %v142_v14 }
  0xd6   :  { %v251_v19 = vpop.f32.mrf.mxu0  ;;  %v255_v20 = vpop.f32.mrf.mxu1 }
  0xd7   :  { %v227_v21 = vpack.c.bf16 %v158_v15, %v158_v15  ;;  %v231_v22 = vpack.c.bf16 %v162_v16, %v162_v16  ;;  %v156_v23 = vmax.f32 %v127_v17, 0.0  ;;  %v160_v24 = vmax.f32 %v143_v18, 0.0 }
  0xd8   :  { %v138_v25 = vadd.f32 %v251_v19, %v205_v8  ;;  %v129_v26 = vpop.f32.mrf.mxu0  ;;  %v145_v27 = vpop.f32.mrf.mxu1 }
  0xd9   :  { %195 = vst.msk [vmem:[%s353_s3 + $0x8] sm:$0xf] %vm192_vm1, %v227_v21  ;;  %v225_v28 = vpack.c.bf16 %v156_v23, %v156_v23  ;;  %v229_v29 = vpack.c.bf16 %v160_v24, %v160_v24  ;;  %v130_v30 = vadd.f32 %v205_v8, %v129_v26  ;;  %v146_v31 = vadd.f32 %v205_v8, %v145_v27 }
  0xda   :  { %200 = vst.msk [vmem:[%s353_s3 + $0x18] sm:$0x1] %vm199_vm2, %v231_v22  ;;  %v159_v32 = vmax.f32 %v138_v25, 0.0 }
  0xdb   :  { %193 = vst.msk [vmem:[%s353_s3] sm:$0xf] %vm192_vm1, %v225_v28  ;;  %197 = vst.msk [vmem:[%s353_s3 + $0x10] sm:$0xf] %vm192_vm1, %v229_v29  ;;  %v157_v33 = vmax.f32 %v130_v30, 0.0  ;;  %v161_v34 = vmax.f32 %v146_v31, 0.0 }
  0xdc   :  { %v228_v35 = vpack.c.bf16 %v159_v32, %v159_v32 }
  0xdd   :  { %v226_v36 = vpack.c.bf16 %v157_v33, %v157_v33  ;;  %v230_v37 = vpack.c.bf16 %v161_v34, %v161_v34 }
  0xde   :  { %196 = vst.msk [vmem:[%s353_s3 + $0xc] sm:$0xf] %vm192_vm1, %v228_v35 }
  0xdf   :  { %194 = vst.msk [vmem:[%s353_s3 + $0x4] sm:$0xf] %vm192_vm1, %v226_v36  ;;  %198 = vst.msk [vmem:[%s353_s3 + $0x14] sm:$0xf] %vm192_vm1, %v230_v37 }

// kernel: generator_forward.7
= control target key start
LH: loop header
LB: loop body
LE: loop exit
PB: predicated region body
PF: predicated region fallthrough
CT: control target
= control target key end

     0   :  { %v461_v0 = vmov 0.0   ;;  %vm462_vm0 = vmmov 0   ;;  %vm112_vm1 = vcmask 261120   ;;  %vm287_vm2 = vcmask 97280   ;;  %s653_s1 = inlined_call_operand.vmem [shape: bf16[32,12], index: 1, kind: input, shape index: {}]   ;;  %s654_s0 = inlined_call_operand.vmem [shape: bf16[162,32], index: 0, kind: input, shape index: {}]   ;;  %s655_s2 = inlined_call_operand.vmem [shape: f32[1,12], index: 2, kind: input, shape index: {}]   ;;  %s656_s3 = inlined_call_operand.vmem [shape: f32[162,12], index: 3, kind: output, shape index: {}]  }
   0x1   :  { %352 = vmatprep.subr.bf16.mxu0 %v461_v0  ;;  %v406_v1 = vld [vmem:[%s653_s1 + $0x8] sm:$0xff]   ;;  %400 = vmatprep.subr.bf16.mxu1 %v461_v0  ;;  %v407_v2 = vld [vmem:[%s653_s1] sm:$0xff]   ;;  %v409_v4 = vld [vmem:[%s654_s0 + $0x30] sm:$0xff]   ;;  %vm308_vm3 = vcmask 91136  }
   0x2   :  { %356 = vmatprep.mubr.msk.bf16.mxu0 %vm462_vm0, %v461_v0  ;;  %380 = vmatprep.mubr.msk.bf16.mxu1 %vm462_vm0, %v461_v0  ;;  %v408_v3 = vld [vmem:[%s654_s0] sm:$0xff]   ;;  %v410_v5 = vld [vmem:[%s654_s0 + $0x8] sm:$0xff]   ;;  %v411_v6 = vld [vmem:[%s654_s0 + $0x38] sm:$0xff]  }
   0x3   :  { %353 = vmatpush3.bf16.msra.mxu0 %v406_v1  ;;  %402 = vmatpush3.bf16.msra.mxu1 %v406_v1  ;;  %v412_v7 = vld [vmem:[%s654_s0 + $0x10] sm:$0xff]   ;;  %v413_v8 = vld [vmem:[%s654_s0 + $0x40] sm:$0xff]   ;;  %v414_v9 = vld [vmem:[%s654_s0 + $0x18] sm:$0xff]  }
   0x4   :  { %354 = vmatprep.subr.bf16.mxu0 %v461_v0  ;;  %401 = vmatprep.subr.bf16.mxu1 %v461_v0  ;;  %v415_v10 = vld [vmem:[%s654_s0 + $0x48] sm:$0xff]   ;;  %v416_v11 = vld [vmem:[%s654_s0 + $0x20] sm:$0xff]   ;;  %v417_v12 = vld [vmem:[%s654_s0 + $0x50] ss:$0 sps:$4 sm:$0x11]  }
   0x5   :  { %v418_v13 = vld [vmem:[%s654_s0 + $0x28] sm:$0xff]   ;;  %v547_v14 = vld [vmem:[%s655_s2] ss:$0 sm:$0xff] }
   0x7   :  { %355 = vmatpush3.bf16.msra.mxu0 %v407_v2  ;;  %403 = vmatpush3.bf16.msra.mxu1 %v407_v2 }
   0xa   :  { %357 = vmatmul.mubr.msk.bf16.vlgmr.msra.gmra.mxu0 %vm112_vm1, %v408_v3  ;;  %381 = vmatmul.mubr.msk.bf16.vlgmr.msra.gmra.mxu1 %vm112_vm1, %v409_v4 }
   0xb   :  { %360 = vmatprep.mubr.msk.bf16.mxu0 %vm462_vm0, %v461_v0  ;;  %384 = vmatprep.mubr.msk.bf16.mxu1 %vm462_vm0, %v461_v0 }
  0x12   :  { %361 = vmatmul.mubr.msk.bf16.gmra.mxu0 %vm112_vm1, %v410_v5  ;;  %385 = vmatmul.mubr.msk.bf16.gmra.mxu1 %vm112_vm1, %v411_v6 }
  0x13   :  { %364 = vmatprep.mubr.msk.bf16.mxu0 %vm462_vm0, %v461_v0  ;;  %388 = vmatprep.mubr.msk.bf16.mxu1 %vm462_vm0, %v461_v0 }
  0x1a   :  { %365 = vmatmul.mubr.msk.bf16.gmra.mxu0 %vm112_vm1, %v412_v7  ;;  %389 = vmatmul.mubr.msk.bf16.gmra.mxu1 %vm112_vm1, %v413_v8 }
  0x1b   :  { %368 = vmatprep.mubr.msk.bf16.mxu0 %vm462_vm0, %v461_v0  ;;  %392 = vmatprep.mubr.msk.bf16.mxu1 %vm462_vm0, %v461_v0 }
  0x22   :  { %369 = vmatmul.mubr.msk.bf16.gmra.mxu0 %vm112_vm1, %v414_v9  ;;  %393 = vmatmul.mubr.msk.bf16.gmra.mxu1 %vm112_vm1, %v415_v10 }
  0x23   :  { %372 = vmatprep.mubr.msk.bf16.mxu0 %vm462_vm0, %v461_v0  ;;  %396 = vmatprep.mubr.msk.bf16.mxu1 %vm462_vm0, %v461_v0 }
  0x2a   :  { %373 = vmatmul.mubr.msk.bf16.gmra.mxu0 %vm112_vm1, %v416_v11  ;;  %397 = vmatmul.mubr.msk.bf16.gmra.mxu1 %vm112_vm1, %v417_v12 }
  0x2b   :  { %376 = vmatprep.mubr.msk.bf16.mxu0 %vm462_vm0, %v461_v0 }
  0x32   :  { %377 = vmatmul.mubr.msk.bf16.gmra.mxu0 %vm112_vm1, %v418_v13 }
  0xca   :  { %v180_v15 = vpop.f32.mrf.mxu0  ;;  %v228_v16 = vpop.f32.mrf.mxu1 }
  0xcb   :  { %v181_v17 = vadd.f32 %v547_v14, %v180_v15  ;;  %v229_v18 = vadd.f32 %v547_v14, %v228_v16 }
  0xcc   :  { %v358_v19 = vpop.f32.mrf.mxu0  ;;  %v382_v20 = vpop.f32.mrf.mxu1 }
  0xcd   :  { %419 = vtanh.f32 %v181_v17 }
  0xce   :  { %v183_v21 = vpop.f32.mrf.mxu0  ;;  %421 = vtanh.f32 %v229_v18  ;;  %v231_v22 = vpop.f32.mrf.mxu1 }
  0xcf   :  { %v184_v23 = vadd.f32 %v547_v14, %v183_v21  ;;  %v232_v24 = vadd.f32 %v547_v14, %v231_v22 }
  0xd0   :  { %v359_v25 = vpop.f32.mrf.mxu0  ;;  %v383_v26 = vpop.f32.mrf.mxu1 }
  0xd1   :  { %423 = vtanh.f32 %v184_v23 }
  0xd2   :  { %v188_v27 = vpop.f32.mrf.mxu0  ;;  %425 = vtanh.f32 %v232_v24  ;;  %v236_v28 = vpop.f32.mrf.mxu1 }
  0xd3   :  { %v189_v29 = vadd.f32 %v547_v14, %v188_v27  ;;  %v237_v30 = vadd.f32 %v547_v14, %v236_v28 }
  0xd4   :  { %v362_v31 = vpop.f32.mrf.mxu0  ;;  %v386_v32 = vpop.f32.mrf.mxu1 }
  0xd5   :  { %427 = vtanh.f32 %v189_v29 }
  0xd6   :  { %v191_v33 = vpop.f32.mrf.mxu0  ;;  %429 = vtanh.f32 %v237_v30  ;;  %v239_v34 = vpop.f32.mrf.mxu1 }
  0xd7   :  { %v192_v35 = vadd.f32 %v547_v14, %v191_v33  ;;  %v240_v36 = vadd.f32 %v547_v14, %v239_v34 }
  0xd8   :  { %v363_v37 = vpop.f32.mrf.mxu0  ;;  %v387_v38 = vpop.f32.mrf.mxu1 }
  0xd9   :  { %431 = vtanh.f32 %v192_v35 }
  0xda   :  { %v420_v39 = vpop.eup %419  ;;  %v196_v40 = vpop.f32.mrf.mxu0  ;;  %433 = vtanh.f32 %v240_v36 }
  0xdb   :  { %v244_v41 = vpop.f32.mrf.mxu1  ;;  %v422_v42 = vpop.eup %421  ;;  %288 = vst.msk [vmem:[%s656_s3] sm:$0xff] %vm287_vm2, %v420_v39  ;;  %v197_v43 = vadd.f32 %v547_v14, %v196_v40 }
  0xdc   :  { %v245_v44 = vadd.f32 %v547_v14, %v244_v41  ;;  %300 = vst.msk [vmem:[%s656_s3 + $0x60] sm:$0xff] %vm287_vm2, %v422_v42  ;;  %v366_v45 = vpop.f32.mrf.mxu0 }
  0xdd   :  { %v390_v46 = vpop.f32.mrf.mxu1  ;;  %435 = vtanh.f32 %v197_v43 }
  0xde   :  { %v424_v47 = vpop.eup %423  ;;  %v199_v48 = vpop.f32.mrf.mxu0  ;;  %437 = vtanh.f32 %v245_v44 }
  0xdf   :  { %v247_v49 = vpop.f32.mrf.mxu1  ;;  %v426_v50 = vpop.eup %425  ;;  %289 = vst.msk [vmem:[%s656_s3 + $0x8] sm:$0xff] %vm287_vm2, %v424_v47  ;;  %v200_v51 = vadd.f32 %v547_v14, %v199_v48 }
  0xe0   :  { %v248_v52 = vadd.f32 %v547_v14, %v247_v49  ;;  %301 = vst.msk [vmem:[%s656_s3 + $0x68] sm:$0xff] %vm287_vm2, %v426_v50  ;;  %v367_v53 = vpop.f32.mrf.mxu0 }
  0xe1   :  { %v391_v54 = vpop.f32.mrf.mxu1  ;;  %439 = vtanh.f32 %v200_v51 }
  0xe2   :  { %v428_v55 = vpop.eup %427  ;;  %v204_v56 = vpop.f32.mrf.mxu0  ;;  %441 = vtanh.f32 %v248_v52 }
  0xe3   :  { %v252_v57 = vpop.f32.mrf.mxu1  ;;  %v430_v58 = vpop.eup %429  ;;  %290 = vst.msk [vmem:[%s656_s3 + $0x10] sm:$0xff] %vm287_vm2, %v428_v55  ;;  %v205_v59 = vadd.f32 %v547_v14, %v204_v56 }
  0xe4   :  { %v253_v60 = vadd.f32 %v547_v14, %v252_v57  ;;  %302 = vst.msk [vmem:[%s656_s3 + $0x70] sm:$0xff] %vm287_vm2, %v430_v58  ;;  %v370_v61 = vpop.f32.mrf.mxu0 }
  0xe5   :  { %v394_v62 = vpop.f32.mrf.mxu1  ;;  %443 = vtanh.f32 %v205_v59 }
  0xe6   :  { %v432_v63 = vpop.eup %431  ;;  %v207_v0 = vpop.f32.mrf.mxu0  ;;  %445 = vtanh.f32 %v253_v60 }
  0xe7   :  { %v255_v1 = vpop.f32.mrf.mxu1  ;;  %v434_v2 = vpop.eup %433  ;;  %291 = vst.msk [vmem:[%s656_s3 + $0x18] sm:$0xff] %vm287_vm2, %v432_v63  ;;  %v208_v3 = vadd.f32 %v547_v14, %v207_v0 }
  0xe8   :  { %v256_v4 = vadd.f32 %v547_v14, %v255_v1  ;;  %303 = vst.msk [vmem:[%s656_s3 + $0x78] sm:$0xff] %vm287_vm2, %v434_v2  ;;  %v371_v5 = vpop.f32.mrf.mxu0 }
  0xe9   :  { %v395_v6 = vpop.f32.mrf.mxu1  ;;  %447 = vtanh.f32 %v208_v3 }
  0xea   :  { %v436_v7 = vpop.eup %435  ;;  %v212_v8 = vpop.f32.mrf.mxu0  ;;  %449 = vtanh.f32 %v256_v4 }
  0xeb   :  { %v260_v9 = vpop.f32.mrf.mxu1  ;;  %v438_v10 = vpop.eup %437  ;;  %292 = vst.msk [vmem:[%s656_s3 + $0x20] sm:$0xff] %vm287_vm2, %v436_v7  ;;  %v213_v11 = vadd.f32 %v547_v14, %v212_v8 }
  0xec   :  { %v261_v12 = vadd.f32 %v547_v14, %v260_v9  ;;  %304 = vst.msk [vmem:[%s656_s3 + $0x80] sm:$0xff] %vm287_vm2, %v438_v10  ;;  %v374_v13 = vpop.f32.mrf.mxu0 }
  0xed   :  { %v398_v15 = vpop.f32.mrf.mxu1  ;;  %451 = vtanh.f32 %v213_v11 }
  0xee   :  { %v440_v16 = vpop.eup %439  ;;  %v215_v17 = vpop.f32.mrf.mxu0  ;;  %453 = vtanh.f32 %v261_v12 }
  0xef   :  { %v263_v18 = vpop.f32.mrf.mxu1  ;;  %v442_v19 = vpop.eup %441  ;;  %293 = vst.msk [vmem:[%s656_s3 + $0x28] sm:$0xff] %vm287_vm2, %v440_v16  ;;  %v216_v20 = vadd.f32 %v547_v14, %v215_v17 }
  0xf0   :  { %305 = vst.msk [vmem:[%s656_s3 + $0x88] sm:$0xff] %vm287_vm2, %v442_v19  ;;  %v375_v21 = vpop.f32.mrf.mxu0 }
  0xf1   :  { %v399_v22 = vpop.f32.mrf.mxu1  ;;  %455 = vtanh.f32 %v216_v20 }
  0xf2   :  { %v444_v23 = vpop.eup %443  ;;  %v220_v24 = vpop.f32.mrf.mxu0 }
  0xf3   :  { %v446_v25 = vpop.eup %445  ;;  %294 = vst.msk [vmem:[%s656_s3 + $0x30] sm:$0xff] %vm287_vm2, %v444_v23  ;;  %v221_v26 = vadd.f32 %v547_v14, %v220_v24 }
  0xf4   :  { %306 = vst.msk [vmem:[%s656_s3 + $0x90] sm:$0xff] %vm287_vm2, %v446_v25  ;;  %v378_v27 = vpop.f32.mrf.mxu0 }
  0xf5   :  { %457 = vtanh.f32 %v221_v26 }
  0xf6   :  { %v448_v28 = vpop.eup %447  ;;  %v223_v29 = vpop.f32.mrf.mxu0 }
  0xf7   :  { %v450_v30 = vpop.eup %449  ;;  %295 = vst.msk [vmem:[%s656_s3 + $0x38] sm:$0xff] %vm287_vm2, %v448_v28  ;;  %v224_v31 = vadd.f32 %v547_v14, %v223_v29 }
  0xf8   :  { %307 = vst.msk [vmem:[%s656_s3 + $0x98] sm:$0xff] %vm287_vm2, %v450_v30  ;;  %v379_v32 = vpop.f32.mrf.mxu0 }
  0xf9   :  { %459 = vtanh.f32 %v224_v31 }
  0xfa   :  { %v452_v33 = vpop.eup %451 }
  0xfb   :  { %v454_v34 = vpop.eup %453  ;;  %296 = vst.msk [vmem:[%s656_s3 + $0x40] sm:$0xff] %vm287_vm2, %v452_v33 }
  0xfc   :  { %309 = vst.msk [vmem:[%s656_s3 + $0xa0] sm:$0x3] %vm308_vm3, %v454_v34 }
  0xfe   :  { %v456_v14 = vpop.eup %455 }
  0xff   :  { %297 = vst.msk [vmem:[%s656_s3 + $0x48] sm:$0xff] %vm287_vm2, %v456_v14 }
 0x102   :  { %v458_v35 = vpop.eup %457 }
 0x103   :  { %298 = vst.msk [vmem:[%s656_s3 + $0x50] sm:$0xff] %vm287_vm2, %v458_v35 }
 0x106   :  { %v460_v36 = vpop.eup %459 }
 0x107   :  { %299 = vst.msk [vmem:[%s656_s3 + $0x58] sm:$0xff] %vm287_vm2, %v460_v36 }

</bundles_post_ra>
